<compile_context>
chip_gen: v7x
topology: tpu7x:2x2x1
jax: 0.10.0
libtpu: 0.0.40
codegen_flags: <defaults>
</compile_context>

<pallas_src>
import functools

import jax
import jax.numpy as jnp
from jax.experimental import pallas as pl
from jax.experimental.pallas import tpu as pltpu

_LANE = 128

# Large-tensor path: 1024-row tile = 512 KiB f32 / 256 KiB bf16 per block
# (~1 MiB double-buffered) — at the HBM-roofline plateau on v5e/v6e and well
# inside v7x's smaller VMEM.  Multiple of 16/32 rows so bf16/int8 tile natively.
_TILE_ROWS = 1024
_BLOCK = _TILE_ROWS * _LANE

# Batched small-tensor path tile (per-parameter padding waste <= 32 KiB).
_SMALL_TILE_ROWS = 64
_SMALL_BLOCK = _SMALL_TILE_ROWS * _LANE

# Tensors at/above one full large block (and lane-aligned) take the zero-copy
# large-tile path; everything else is packed into one batched launch.
_LARGE_MIN_ELEMS = _BLOCK
_NCORES = 2  # v7x has 2 TensorCores; a size-<=2 "parallel" axis is harmless elsewhere.


# ----------------------------------------------------------------------------
# Large-tensor kernel: zero-copy, big tiles, masked ragged tail, 2-core split.
# ----------------------------------------------------------------------------
def _make_large_sumsq_kernel(rows, tiles_per_core, need_mask):
    """Per-lane sum-of-squares, accumulated directly in the (1,8,128) out block."""

    def kernel(x_ref, o_ref):
        j = pl.program_id(1)  # reduction axis (arbitrary)

        @pl.when(j == 0)
        def _init():
            o_ref[...] = jnp.zeros_like(o_ref)

        # DMA happened in the input's native dtype; cast on the VPU here.
        x = x_ref[...].astype(jnp.float32)
        sq = x * x

        if need_mask:
            # The last tile (and any duplicated, clamped tile of the 2-core
            # split) extends past the array: zero rows by *logical* row index.
            t = pl.program_id(0) * tiles_per_core + j  # logical tile index
            row = jax.lax.broadcasted_iota(jnp.int32, sq.shape, 0) + t * _TILE_ROWS
            sq = jnp.where(row < rows, sq, 0.0)

        # (TILE_ROWS,128) -> (TILE_ROWS//8, 8, 128) keeps (8,128) vreg tiles
        # intact (free reshape); the axis-0 sum is pure VPU vreg adds, so the
        # per-step critical path has no XLU / scalar accumulator on it.
        o_ref[...] += jnp.sum(
            sq.reshape(_TILE_ROWS // 8, 8, _LANE), axis=0, keepdims=True)

    return kernel


@jax.jit
def _l2_norm_large(x):
    """||x||_2 for a large tensor whose element count is a multiple of 128.

    No extra HBM pass: reshape to (rows, 128) is a bitcast, no host padding,
    no host dtype upcast.  The reduction is split across (up to) 2 TensorCores
    via a leading "parallel" grid axis; each core produces a per-lane partial
    sum and the tiny final reduce + sqrt happens outside the kernel.
    """
    flat = x.reshape(-1)
    n = flat.shape[0]
    assert n % _LANE == 0
    rows = n // _LANE
    x2d = flat.reshape(rows, _LANE)

    total_tiles = pl.cdiv(rows, _TILE_ROWS)
    ncores = min(_NCORES, total_tiles)
    tiles_per_core = pl.cdiv(total_tiles, ncores)
    need_mask = (ncores * tiles_per_core * _TILE_ROWS) != rows

    def x_index_map(c, j):
        # Clamp so we never request a block that lies fully past the array;
        # the logical-index mask in the kernel zeroes any such duplicate read.
        return (jnp.minimum(c * tiles_per_core + j, total_tiles - 1), 0)

    partials = pl.pallas_call(
        _make_large_sumsq_kernel(rows, tiles_per_core, need_mask),
        out_shape=jax.ShapeDtypeStruct((ncores, 8, _LANE), jnp.float32),
        grid=(ncores, tiles_per_core),
        in_specs=[pl.BlockSpec((_TILE_ROWS, _LANE), x_index_map)],
        out_specs=pl.BlockSpec((1, 8, _LANE), lambda c, j: (c, 0, 0)),
        compiler_params=pltpu.CompilerParams(
            dimension_semantics=("parallel", "arbitrary")),
    )(x2d)
    return jnp.sqrt(jnp.sum(partials))


# ----------------------------------------------------------------------------
# Batched small-tensor kernel: many parameters, one launch, segmented via
# scalar prefetch (per-tile parameter id drives the output index_map).
# ----------------------------------------------------------------------------
def _batched_sumsq_kernel(tile_param_ref, tile_first_ref, x_ref, o_ref):
    del tile_param_ref  # consumed by the output index_map only
    t = pl.program_id(0)

    @pl.when(tile_first_ref[t] == 1)  # first tile of a new parameter
    def _init():
        o_ref[...] = jnp.zeros_like(o_ref)

    x = x_ref[...].astype(jnp.float32)
    sq = x * x
    o_ref[...] += jnp.sum(
        sq.reshape(_SMALL_TILE_ROWS // 8, 8, _LANE), axis=0, keepdims=True)


def _num_small_tiles(n):
    return max(1, -(-n // _SMALL_BLOCK))


@jax.jit
def _batched_l2_norms(tile_param, tile_first, *params):
    """L2 norms of many small same-dtype tensors in a single pallas_call."""
    num_params = len(params)
    pieces = []
    for p in params:
        flat = p.reshape(-1)
        padded = _num_small_tiles(flat.shape[0]) * _SMALL_BLOCK
        if padded != flat.shape[0]:
            flat = jnp.concatenate(
                [flat, jnp.zeros((padded - flat.shape[0],), flat.dtype)])
        pieces.append(flat)
    data = jnp.concatenate(pieces).reshape(-1, _LANE)  # small by construction
    num_tiles = data.shape[0] // _SMALL_TILE_ROWS

    out = pl.pallas_call(
        _batched_sumsq_kernel,
        out_shape=jax.ShapeDtypeStruct((num_params, 8, _LANE), jnp.float32),
        grid_spec=pltpu.PrefetchScalarGridSpec(
            num_scalar_prefetch=2,
            grid=(num_tiles,),
            in_specs=[pl.BlockSpec((_SMALL_TILE_ROWS, _LANE),
                                   lambda t, tp, tf: (t, 0))],
            out_specs=pl.BlockSpec((1, 8, _LANE),
                                   lambda t, tp, tf: (tp[t], 0, 0)),
        ),
        compiler_params=pltpu.CompilerParams(
            dimension_semantics=("arbitrary",)),
    )(tile_param, tile_first, data)
    return jnp.sqrt(out.sum(axis=(1, 2)))  # (num_params,)


# ----------------------------------------------------------------------------
# Public wrappers.
# ----------------------------------------------------------------------------
def _takes_large_path(x):
    return (x.size >= _LARGE_MIN_ELEMS) and (x.size % _LANE == 0)


def pallas_l2_norms(named_arrays):
    """L2 norm of every array, minimizing kernel launches.

    Large lane-aligned tensors each get one zero-copy big-tile launch; all
    small / ragged tensors are packed (per dtype) into a single batched launch.
    """
    results = {}
    small_groups = {}
    for name, arr in named_arrays.items():
        arr = jnp.asarray(arr)
        if _takes_large_path(arr):
            results[name] = _l2_norm_large(arr)
        else:
            small_groups.setdefault(jnp.dtype(arr.dtype), []).append((name, arr))

    for _, items in small_groups.items():
        names = [n for n, _ in items]
        arrs = [a for _, a in items]
        tile_param, tile_first = [], []
        for g, a in enumerate(arrs):
            tiles = _num_small_tiles(a.size)
            tile_param += [g] * tiles
            tile_first += [1] + [0] * (tiles - 1)
        norms = _batched_l2_norms(
            jnp.asarray(tile_param, jnp.int32),
            jnp.asarray(tile_first, jnp.int32),
            *arrs)
        for g, name in enumerate(names):
            results[name] = norms[g]
    return results


def pallas_l2_norm(x):
    """||x||_2 over all elements, computed in a Pallas TPU kernel."""
    return pallas_l2_norms({"x": x})["x"]


def extend_dicts(dict1, dict2):
    """JAX port of the reference helper (pure concatenation glue, no kernel)."""
    if len(dict1) == 0:
        for key, val in dict2.items():
            dict1[key] = jnp.asarray(val)
        return
    assert set(dict1.keys()) == set(dict2.keys())
    for key, val in dict2.items():
        dict1[key] = jnp.concatenate([dict1[key], jnp.asarray(val)])
    return


class _Args:
    def __init__(self):
        self.optimizer = "adam"
        self.optimizer_kwargs = {"lr": 1e-3}
        self.scheduler_kwargs = {"step_size": 10}
        self.scheduler_type = "step"


class DeepLearningModelPallas:
    """Mirror of the (abstract) PyTorch DeepLearningModel base class."""

    def __init__(self, args):
        self.prefixes_of_vars_to_freeze = []
        self.optimizer_name = args.optimizer
        self.optimizer_kwargs = args.optimizer_kwargs
        self.scheduler_kwargs = args.scheduler_kwargs
        self.scheduler_type = args.scheduler_type
        self.layer_magnitudes = {}
        # The base class registers no parameters; we attach deterministic
        # synthetic "named parameters" so print_layer_magnitudes has work.
        self._params = {}

    def add_parameter(self, name, value):
        self._params[name] = value

    def named_parameters(self):
        return self._params.items()

    def forward(self, X):
        # Exact semantics of the reference module's forward pass.
        raise NotImplementedError()

    def forward_with_intervention(self, X, labels):
        raise NotImplementedError()

    def print_layer_magnitudes(self, epoch):
        # Hot path: L2 norm of every parameter, computed with as few Pallas
        # launches as possible (one batched call for small params, one
        # big-tile call per large param).
        params = dict(self.named_parameters())
        mags = pallas_l2_norms(params)
        for name in params:
            magnitude = mags[name]
            if name not in self.layer_magnitudes:
                self.layer_magnitudes[name] = magnitude
                print("The magnitude of layer %s at epoch %i is %2.5f"
                      % (name, epoch, float(magnitude)))
            else:
                old = self.layer_magnitudes[name]
                delta = magnitude - old
                print("The magnitude of layer %s at epoch %i is %2.5f (delta %2.5f from last epoch)"
                      % (name, epoch, float(magnitude), float(delta)))
                self.layer_magnitudes[name] = magnitude
        return mags

    # TODO(synk): train_or_eval_dataset / fit / loss / analyse_predictions /
    # setup_optimizers are host-side training-loop orchestration over abstract
    # methods (torch.optim / lr_scheduler); no device compute to translate.


if __name__ == "__main__":
    key = jax.random.PRNGKey(0)
    k_x, k_w1, k_w2, k_w3, k_w4 = jax.random.split(key, 5)

    # Example input consistent with the CNN-flavoured subclass usage (NCHW).
    x = jax.random.normal(k_x, (2, 4, 16, 16), dtype=jnp.float32)

    model = DeepLearningModelPallas(_Args())
    # Small f32 params -> single batched launch.
    model.add_parameter("fc.weight",
                        jax.random.normal(k_w1, (32, 64), dtype=jnp.float32))
    model.add_parameter("fc.bias",
                        jax.random.normal(k_w2, (32,), dtype=jnp.float32))
    # Large params -> big-tile zero-copy path (f32 exact tile; bf16 ragged tile
    # exercising native-dtype DMA, in-kernel cast, masking and the 2-core split).
    model.add_parameter("backbone.weight",
                        jax.random.normal(k_w3, (512, 256), dtype=jnp.float32))
    model.add_parameter("proj.weight",
                        jax.random.normal(k_w4, (640, 512),
                                          dtype=jnp.float32).astype(jnp.bfloat16))

    # 1) forward() semantics: must raise NotImplementedError, as in PyTorch.
    raised = False
    try:
        model.forward(x)
    except NotImplementedError:
        raised = True
    assert raised, "forward() must raise NotImplementedError"

    # 2) Run the Pallas layer-magnitude kernels (and on the input as well).
    mags = model.print_layer_magnitudes(epoch=0)
    x_norm = pallas_l2_norm(x)
    jax.block_until_ready(x_norm)
    for v in mags.values():
        jax.block_until_ready(v)

    # 3) Check against pure-JAX references.
    assert jnp.allclose(x_norm, jnp.linalg.norm(x.reshape(-1)),
                        rtol=1e-4, atol=1e-5)
    for name, param in model.named_parameters():
        ref = jnp.linalg.norm(param.astype(jnp.float32).reshape(-1))
        assert jnp.allclose(mags[name], ref, rtol=1e-4, atol=1e-5), name

    # 4) extend_dicts glue check.
    d = {}
    extend_dicts(d, {"y": jnp.ones((2, 3))})
    extend_dicts(d, {"y": jnp.zeros((2, 3))})
    assert d["y"].shape == (4, 3)

    print("KERNEL_OK")
</pallas_src>

<mosaic_0001>
module attributes {stable_mosaic.version = 11 : i64} {
  func.func @kernel(%arg0: i32, %arg1: i32, %arg2: memref<1024x128xf32, #tpu.memory_space<vmem>>, %arg3: memref<1x8x128xf32, #tpu.memory_space<vmem>>) attributes {dimension_semantics = [#tpu.dimension_semantics<parallel>, #tpu.dimension_semantics<arbitrary>], iteration_bounds = array<i64: 1, 1>, scalar_prefetch = 0 : i64, scratch_operands = 0 : i64, tpu.core_type = #tpu.core_type<tc>, window_params = [{transform_indices = @transform_0, window_bounds = array<i64: 1024, 128>}, {transform_indices = @transform_1, window_bounds = array<i64: 1, 8, 128>}]} {
    %c0_i32 = arith.constant 0 : i32
    %0 = arith.cmpi eq, %arg1, %c0_i32 : i32
    %1 = arith.extui %0 : i1 to i32
    %c0_i32_0 = arith.constant 0 : i32
    %2 = arith.cmpi ne, %1, %c0_i32_0 : i32
    scf.if %2 {
      %cst_8 = arith.constant 0.000000e+00 : f32
      %11 = vector.broadcast %cst_8 : f32 to vector<1x8x128xf32>
      %c0_9 = arith.constant 0 : index
      %c0_10 = arith.constant 0 : index
      %c0_11 = arith.constant 0 : index
      %12 = vector.load %arg3[%c0_9, %c0_10, %c0_11] : memref<1x8x128xf32, #tpu.memory_space<vmem>>, vector<1x8x128xf32>
      tpu.vector_store %arg3[%c0_9, %c0_10, %c0_11], %11 {strides = array<i32>} : memref<1x8x128xf32, #tpu.memory_space<vmem>>, vector<1x8x128xf32>,
    } else {
    }
    %c0 = arith.constant 0 : index
    %c0_1 = arith.constant 0 : index
    %3 = vector.load %arg2[%c0, %c0_1] : memref<1024x128xf32, #tpu.memory_space<vmem>>, vector<1024x128xf32>
    %4 = arith.mulf %3, %3 : vector<1024x128xf32>
    %c0_2 = arith.constant 0 : index
    %c0_3 = arith.constant 0 : index
    %c0_4 = arith.constant 0 : index
    %5 = vector.load %arg3[%c0_2, %c0_3, %c0_4] : memref<1x8x128xf32, #tpu.memory_space<vmem>>, vector<1x8x128xf32>
    %6 = vector.shape_cast %4 : vector<1024x128xf32> to vector<128x8x128xf32>
    %cst = arith.constant dense<0.000000e+00> : vector<8x128xf32>
    %7 = vector.multi_reduction <add>, %6, %cst [0] : vector<128x8x128xf32> to vector<8x128xf32>
    %8 = vector.shape_cast %7 : vector<8x128xf32> to vector<1x8x128xf32>
    %9 = arith.addf %5, %8 : vector<1x8x128xf32>
    %c0_5 = arith.constant 0 : index
    %c0_6 = arith.constant 0 : index
    %c0_7 = arith.constant 0 : index
    %10 = vector.load %arg3[%c0_5, %c0_6, %c0_7] : memref<1x8x128xf32, #tpu.memory_space<vmem>>, vector<1x8x128xf32>
    tpu.vector_store %arg3[%c0_5, %c0_6, %c0_7], %9 {strides = array<i32>} : memref<1x8x128xf32, #tpu.memory_space<vmem>>, vector<1x8x128xf32>,
    return
  }
  func.func @transform_0(%arg0: i32, %arg1: i32) -> (i32, i32) {
    %c1_i32 = arith.constant 1 : i32
    %0 = arith.muli %arg0, %c1_i32 : i32
    %1 = arith.addi %0, %arg1 : i32
    %c0_i32 = arith.constant 0 : i32
    %2 = arith.minsi %1, %c0_i32 : i32
    %c0_i32_0 = arith.constant 0 : i32
    %c0_i32_1 = arith.constant 0 : i32
    return %2, %c0_i32_0 : i32, i32
  }
  func.func @transform_1(%arg0: i32, %arg1: i32) -> (i32, i32, i32) {
    %c0_i32 = arith.constant 0 : i32
    %c0_i32_0 = arith.constant 0 : i32
    %c0_i32_1 = arith.constant 0 : i32
    return %arg0, %c0_i32, %c0_i32_0 : i32, i32, i32
  }
}

</mosaic_0001>

<bundles_post_ra>
// kernel: _l2_norm_large.1
= control target key start
LH: loop header
LB: loop body
LE: loop exit
PB: predicated region body
PF: predicated region fallthrough
CT: control target
= control target key end

     0   :  { %s839_s0 = inlined_call_operand.vmem [shape: f32[1024,128], index: 0, kind: input, shape index: {}]   ;;  %s840_s1 = inlined_call_operand.vmem [shape: f32[1,8,128], index: 1, kind: output, shape index: {}]  }
   0x1   :  { %v45_v0 = vld [vmem:[%s839_s0] sm:$0xff]  ;;  %v46_v1 = vld [vmem:[%s839_s0 + $0x8] sm:$0xff]  ;;  %v47_v2 = vld [vmem:[%s839_s0 + $0x10] sm:$0xff] }
   0x2   :  { %v48_v3 = vld [vmem:[%s839_s0 + $0x18] sm:$0xff]  ;;  %v173_v4 = vmul.f32 %v45_v0, %v45_v0  ;;  %v174_v5 = vmul.f32 %v46_v1, %v46_v1  ;;  %v175_v6 = vmul.f32 %v47_v2, %v47_v2  ;;  %v49_v7 = vld [vmem:[%s839_s0 + $0x20] sm:$0xff]  ;;  %v50_v10 = vld [vmem:[%s839_s0 + $0x28] sm:$0xff] }
   0x3   :  { %v176_v8 = vmul.f32 %v48_v3, %v48_v3  ;;  %v177_v11 = vmul.f32 %v49_v7, %v49_v7  ;;  %v51_v13 = vld [vmem:[%s839_s0 + $0x30] sm:$0xff]  ;;  %v178_v14 = vmul.f32 %v50_v10, %v50_v10  ;;  %v52_v16 = vld [vmem:[%s839_s0 + $0x38] sm:$0xff]  ;;  %v53_v19 = vld [vmem:[%s839_s0 + $0x40] sm:$0xff] }
   0x4   :  { %v302_v9 = vadd.f32 %v174_v5, %v173_v4  ;;  %v179_v17 = vmul.f32 %v51_v13, %v51_v13  ;;  %v180_v20 = vmul.f32 %v52_v16, %v52_v16  ;;  %v54_v22 = vld [vmem:[%s839_s0 + $0x48] sm:$0xff]  ;;  %v181_v23 = vmul.f32 %v53_v19, %v53_v19  ;;  %v55_v25 = vld [vmem:[%s839_s0 + $0x50] sm:$0xff]  ;;  %v56_v28 = vld [vmem:[%s839_s0 + $0x58] sm:$0xff] }
   0x5   :  { %v182_v26 = vmul.f32 %v54_v22, %v54_v22  ;;  %v183_v29 = vmul.f32 %v55_v25, %v55_v25  ;;  %v57_v31 = vld [vmem:[%s839_s0 + $0x60] sm:$0xff]  ;;  %v184_v32 = vmul.f32 %v56_v28, %v56_v28  ;;  %v58_v34 = vld [vmem:[%s839_s0 + $0x68] sm:$0xff]  ;;  %v59_v37 = vld [vmem:[%s839_s0 + $0x70] sm:$0xff] }
   0x6   :  { %v303_v12 = vadd.f32 %v302_v9, %v175_v6  ;;  %v185_v35 = vmul.f32 %v57_v31, %v57_v31  ;;  %v186_v38 = vmul.f32 %v58_v34, %v58_v34  ;;  %v60_v40 = vld [vmem:[%s839_s0 + $0x78] sm:$0xff]  ;;  %v187_v41 = vmul.f32 %v59_v37, %v59_v37  ;;  %v61_v43 = vld [vmem:[%s839_s0 + $0x80] sm:$0xff]  ;;  %v62_v46 = vld [vmem:[%s839_s0 + $0x88] sm:$0xff] }
   0x7   :  { %v188_v44 = vmul.f32 %v60_v40, %v60_v40  ;;  %v189_v47 = vmul.f32 %v61_v43, %v61_v43  ;;  %v63_v49 = vld [vmem:[%s839_s0 + $0x90] sm:$0xff]  ;;  %v190_v50 = vmul.f32 %v62_v46, %v62_v46  ;;  %v64_v52 = vld [vmem:[%s839_s0 + $0x98] sm:$0xff]  ;;  %v65_v55 = vld [vmem:[%s839_s0 + $0xa0] sm:$0xff] }
   0x8   :  { %v304_v15 = vadd.f32 %v303_v12, %v176_v8  ;;  %v191_v53 = vmul.f32 %v63_v49, %v63_v49  ;;  %v192_v56 = vmul.f32 %v64_v52, %v64_v52  ;;  %v66_v58 = vld [vmem:[%s839_s0 + $0xa8] sm:$0xff]  ;;  %v193_v59 = vmul.f32 %v65_v55, %v65_v55  ;;  %v67_v61 = vld [vmem:[%s839_s0 + $0xb0] sm:$0xff]  ;;  %v68_v0 = vld [vmem:[%s839_s0 + $0xb8] sm:$0xff] }
   0x9   :  { %v194_v62 = vmul.f32 %v66_v58, %v66_v58  ;;  %v195_v1 = vmul.f32 %v67_v61, %v67_v61  ;;  %v69_v3 = vld [vmem:[%s839_s0 + $0xc0] sm:$0xff]  ;;  %v196_v4 = vmul.f32 %v68_v0, %v68_v0  ;;  %v70_v6 = vld [vmem:[%s839_s0 + $0xc8] sm:$0xff]  ;;  %v71_v9 = vld [vmem:[%s839_s0 + $0xd0] sm:$0xff] }
   0xa   :  { %v305_v18 = vadd.f32 %v304_v15, %v177_v11  ;;  %v197_v7 = vmul.f32 %v69_v3, %v69_v3  ;;  %v198_v10 = vmul.f32 %v70_v6, %v70_v6  ;;  %v72_v12 = vld [vmem:[%s839_s0 + $0xd8] sm:$0xff]  ;;  %v199_v13 = vmul.f32 %v71_v9, %v71_v9  ;;  %v73_v15 = vld [vmem:[%s839_s0 + $0xe0] sm:$0xff] }
   0xb   :  { %v200_v16 = vmul.f32 %v72_v12, %v72_v12  ;;  %v201_v19 = vmul.f32 %v73_v15, %v73_v15 }
   0xc   :  { %v306_v21 = vadd.f32 %v305_v18, %v178_v14  ;;  %v74_v18 = vld [vmem:[%s839_s0 + $0xe8] sm:$0xff] }
   0xd   :  { %v202_v22 = vmul.f32 %v74_v18, %v74_v18 }
   0xe   :  { %v307_v24 = vadd.f32 %v306_v21, %v179_v17  ;;  %v75_v21 = vld [vmem:[%s839_s0 + $0xf0] sm:$0xff] }
   0xf   :  { %v203_v25 = vmul.f32 %v75_v21, %v75_v21 }
  0x10   :  { %v308_v27 = vadd.f32 %v307_v24, %v180_v20  ;;  %v76_v24 = vld [vmem:[%s839_s0 + $0xf8] sm:$0xff] }
  0x11   :  { %v204_v28 = vmul.f32 %v76_v24, %v76_v24 }
  0x12   :  { %v309_v30 = vadd.f32 %v308_v27, %v181_v23  ;;  %v77_v27 = vld [vmem:[%s839_s0 + $0x100] sm:$0xff] }
  0x13   :  { %v205_v31 = vmul.f32 %v77_v27, %v77_v27 }
  0x14   :  { %v310_v33 = vadd.f32 %v309_v30, %v182_v26  ;;  %v78_v30 = vld [vmem:[%s839_s0 + $0x108] sm:$0xff] }
  0x15   :  { %v206_v34 = vmul.f32 %v78_v30, %v78_v30 }
  0x16   :  { %v311_v36 = vadd.f32 %v310_v33, %v183_v29  ;;  %v79_v33 = vld [vmem:[%s839_s0 + $0x110] sm:$0xff] }
  0x17   :  { %v207_v37 = vmul.f32 %v79_v33, %v79_v33 }
  0x18   :  { %v312_v39 = vadd.f32 %v311_v36, %v184_v32  ;;  %v80_v36 = vld [vmem:[%s839_s0 + $0x118] sm:$0xff] }
  0x19   :  { %v208_v40 = vmul.f32 %v80_v36, %v80_v36 }
  0x1a   :  { %v313_v42 = vadd.f32 %v312_v39, %v185_v35  ;;  %v81_v39 = vld [vmem:[%s839_s0 + $0x120] sm:$0xff] }
  0x1b   :  { %v209_v43 = vmul.f32 %v81_v39, %v81_v39 }
  0x1c   :  { %v314_v45 = vadd.f32 %v313_v42, %v186_v38  ;;  %v82_v42 = vld [vmem:[%s839_s0 + $0x128] sm:$0xff] }
  0x1d   :  { %v210_v46 = vmul.f32 %v82_v42, %v82_v42 }
  0x1e   :  { %v315_v48 = vadd.f32 %v314_v45, %v187_v41  ;;  %v83_v45 = vld [vmem:[%s839_s0 + $0x130] sm:$0xff] }
  0x1f   :  { %v211_v49 = vmul.f32 %v83_v45, %v83_v45 }
  0x20   :  { %v316_v51 = vadd.f32 %v315_v48, %v188_v44  ;;  %v84_v48 = vld [vmem:[%s839_s0 + $0x138] sm:$0xff] }
  0x21   :  { %v212_v52 = vmul.f32 %v84_v48, %v84_v48 }
  0x22   :  { %v317_v54 = vadd.f32 %v316_v51, %v189_v47  ;;  %v85_v51 = vld [vmem:[%s839_s0 + $0x140] sm:$0xff] }
  0x23   :  { %v213_v55 = vmul.f32 %v85_v51, %v85_v51 }
  0x24   :  { %v318_v57 = vadd.f32 %v317_v54, %v190_v50  ;;  %v86_v54 = vld [vmem:[%s839_s0 + $0x148] sm:$0xff] }
  0x25   :  { %v214_v58 = vmul.f32 %v86_v54, %v86_v54 }
  0x26   :  { %v319_v60 = vadd.f32 %v318_v57, %v191_v53  ;;  %v87_v57 = vld [vmem:[%s839_s0 + $0x150] sm:$0xff] }
  0x27   :  { %v215_v61 = vmul.f32 %v87_v57, %v87_v57 }
  0x28   :  { %v320_v63 = vadd.f32 %v319_v60, %v192_v56  ;;  %v88_v60 = vld [vmem:[%s839_s0 + $0x158] sm:$0xff] }
  0x29   :  { %v216_v0 = vmul.f32 %v88_v60, %v88_v60 }
  0x2a   :  { %v321_v2 = vadd.f32 %v320_v63, %v193_v59  ;;  %v89_v63 = vld [vmem:[%s839_s0 + $0x160] sm:$0xff] }
  0x2b   :  { %v217_v3 = vmul.f32 %v89_v63, %v89_v63 }
  0x2c   :  { %v322_v5 = vadd.f32 %v321_v2, %v194_v62  ;;  %v90_v2 = vld [vmem:[%s839_s0 + $0x168] sm:$0xff] }
  0x2d   :  { %v218_v6 = vmul.f32 %v90_v2, %v90_v2 }
  0x2e   :  { %v323_v8 = vadd.f32 %v322_v5, %v195_v1  ;;  %v91_v5 = vld [vmem:[%s839_s0 + $0x170] sm:$0xff] }
  0x2f   :  { %v219_v9 = vmul.f32 %v91_v5, %v91_v5 }
  0x30   :  { %v324_v11 = vadd.f32 %v323_v8, %v196_v4  ;;  %v92_v8 = vld [vmem:[%s839_s0 + $0x178] sm:$0xff] }
  0x31   :  { %v220_v12 = vmul.f32 %v92_v8, %v92_v8 }
  0x32   :  { %v325_v14 = vadd.f32 %v324_v11, %v197_v7  ;;  %v93_v11 = vld [vmem:[%s839_s0 + $0x180] sm:$0xff] }
  0x33   :  { %v221_v15 = vmul.f32 %v93_v11, %v93_v11 }
  0x34   :  { %v326_v17 = vadd.f32 %v325_v14, %v198_v10  ;;  %v94_v14 = vld [vmem:[%s839_s0 + $0x188] sm:$0xff] }
  0x35   :  { %v222_v18 = vmul.f32 %v94_v14, %v94_v14 }
  0x36   :  { %v327_v20 = vadd.f32 %v326_v17, %v199_v13  ;;  %v95_v17 = vld [vmem:[%s839_s0 + $0x190] sm:$0xff] }
  0x37   :  { %v223_v21 = vmul.f32 %v95_v17, %v95_v17 }
  0x38   :  { %v328_v23 = vadd.f32 %v327_v20, %v200_v16  ;;  %v96_v20 = vld [vmem:[%s839_s0 + $0x198] sm:$0xff] }
  0x39   :  { %v224_v24 = vmul.f32 %v96_v20, %v96_v20 }
  0x3a   :  { %v329_v26 = vadd.f32 %v328_v23, %v201_v19  ;;  %v97_v23 = vld [vmem:[%s839_s0 + $0x1a0] sm:$0xff] }
  0x3b   :  { %v225_v27 = vmul.f32 %v97_v23, %v97_v23 }
  0x3c   :  { %v330_v29 = vadd.f32 %v329_v26, %v202_v22  ;;  %v98_v26 = vld [vmem:[%s839_s0 + $0x1a8] sm:$0xff] }
  0x3d   :  { %v226_v30 = vmul.f32 %v98_v26, %v98_v26 }
  0x3e   :  { %v331_v32 = vadd.f32 %v330_v29, %v203_v25  ;;  %v99_v29 = vld [vmem:[%s839_s0 + $0x1b0] sm:$0xff] }
  0x3f   :  { %v227_v33 = vmul.f32 %v99_v29, %v99_v29 }
  0x40   :  { %v332_v35 = vadd.f32 %v331_v32, %v204_v28  ;;  %v100_v32 = vld [vmem:[%s839_s0 + $0x1b8] sm:$0xff] }
  0x41   :  { %v228_v36 = vmul.f32 %v100_v32, %v100_v32 }
  0x42   :  { %v333_v38 = vadd.f32 %v332_v35, %v205_v31  ;;  %v101_v35 = vld [vmem:[%s839_s0 + $0x1c0] sm:$0xff] }
  0x43   :  { %v229_v39 = vmul.f32 %v101_v35, %v101_v35 }
  0x44   :  { %v334_v41 = vadd.f32 %v333_v38, %v206_v34  ;;  %v102_v38 = vld [vmem:[%s839_s0 + $0x1c8] sm:$0xff] }
  0x45   :  { %v230_v42 = vmul.f32 %v102_v38, %v102_v38 }
  0x46   :  { %v335_v44 = vadd.f32 %v334_v41, %v207_v37  ;;  %v103_v41 = vld [vmem:[%s839_s0 + $0x1d0] sm:$0xff] }
  0x47   :  { %v231_v45 = vmul.f32 %v103_v41, %v103_v41 }
  0x48   :  { %v336_v47 = vadd.f32 %v335_v44, %v208_v40  ;;  %v104_v44 = vld [vmem:[%s839_s0 + $0x1d8] sm:$0xff] }
  0x49   :  { %v232_v48 = vmul.f32 %v104_v44, %v104_v44 }
  0x4a   :  { %v337_v50 = vadd.f32 %v336_v47, %v209_v43  ;;  %v105_v47 = vld [vmem:[%s839_s0 + $0x1e0] sm:$0xff] }
  0x4b   :  { %v233_v51 = vmul.f32 %v105_v47, %v105_v47 }
  0x4c   :  { %v338_v53 = vadd.f32 %v337_v50, %v210_v46  ;;  %v106_v50 = vld [vmem:[%s839_s0 + $0x1e8] sm:$0xff] }
  0x4d   :  { %v234_v54 = vmul.f32 %v106_v50, %v106_v50 }
  0x4e   :  { %v339_v56 = vadd.f32 %v338_v53, %v211_v49  ;;  %v107_v53 = vld [vmem:[%s839_s0 + $0x1f0] sm:$0xff] }
  0x4f   :  { %v235_v57 = vmul.f32 %v107_v53, %v107_v53 }
  0x50   :  { %v340_v59 = vadd.f32 %v339_v56, %v212_v52  ;;  %v108_v56 = vld [vmem:[%s839_s0 + $0x1f8] sm:$0xff] }
  0x51   :  { %v236_v60 = vmul.f32 %v108_v56, %v108_v56 }
  0x52   :  { %v341_v62 = vadd.f32 %v340_v59, %v213_v55  ;;  %v109_v59 = vld [vmem:[%s839_s0 + $0x200] sm:$0xff] }
  0x53   :  { %v237_v63 = vmul.f32 %v109_v59, %v109_v59 }
  0x54   :  { %v342_v1 = vadd.f32 %v341_v62, %v214_v58  ;;  %v110_v62 = vld [vmem:[%s839_s0 + $0x208] sm:$0xff] }
  0x55   :  { %v238_v2 = vmul.f32 %v110_v62, %v110_v62 }
  0x56   :  { %v343_v4 = vadd.f32 %v342_v1, %v215_v61  ;;  %v111_v1 = vld [vmem:[%s839_s0 + $0x210] sm:$0xff] }
  0x57   :  { %v239_v5 = vmul.f32 %v111_v1, %v111_v1 }
  0x58   :  { %v344_v7 = vadd.f32 %v343_v4, %v216_v0  ;;  %v112_v4 = vld [vmem:[%s839_s0 + $0x218] sm:$0xff] }
  0x59   :  { %v240_v8 = vmul.f32 %v112_v4, %v112_v4 }
  0x5a   :  { %v345_v10 = vadd.f32 %v344_v7, %v217_v3  ;;  %v113_v7 = vld [vmem:[%s839_s0 + $0x220] sm:$0xff] }
  0x5b   :  { %v241_v11 = vmul.f32 %v113_v7, %v113_v7 }
  0x5c   :  { %v346_v13 = vadd.f32 %v345_v10, %v218_v6  ;;  %v114_v10 = vld [vmem:[%s839_s0 + $0x228] sm:$0xff] }
  0x5d   :  { %v242_v14 = vmul.f32 %v114_v10, %v114_v10 }
  0x5e   :  { %v347_v16 = vadd.f32 %v346_v13, %v219_v9  ;;  %v115_v13 = vld [vmem:[%s839_s0 + $0x230] sm:$0xff] }
  0x5f   :  { %v243_v17 = vmul.f32 %v115_v13, %v115_v13 }
  0x60   :  { %v348_v19 = vadd.f32 %v347_v16, %v220_v12  ;;  %v116_v16 = vld [vmem:[%s839_s0 + $0x238] sm:$0xff] }
  0x61   :  { %v244_v20 = vmul.f32 %v116_v16, %v116_v16 }
  0x62   :  { %v349_v22 = vadd.f32 %v348_v19, %v221_v15  ;;  %v117_v19 = vld [vmem:[%s839_s0 + $0x240] sm:$0xff] }
  0x63   :  { %v245_v23 = vmul.f32 %v117_v19, %v117_v19 }
  0x64   :  { %v350_v25 = vadd.f32 %v349_v22, %v222_v18  ;;  %v118_v22 = vld [vmem:[%s839_s0 + $0x248] sm:$0xff] }
  0x65   :  { %v246_v26 = vmul.f32 %v118_v22, %v118_v22 }
  0x66   :  { %v351_v28 = vadd.f32 %v350_v25, %v223_v21  ;;  %v119_v25 = vld [vmem:[%s839_s0 + $0x250] sm:$0xff] }
  0x67   :  { %v247_v29 = vmul.f32 %v119_v25, %v119_v25 }
  0x68   :  { %v352_v31 = vadd.f32 %v351_v28, %v224_v24  ;;  %v120_v28 = vld [vmem:[%s839_s0 + $0x258] sm:$0xff] }
  0x69   :  { %v248_v32 = vmul.f32 %v120_v28, %v120_v28 }
  0x6a   :  { %v353_v34 = vadd.f32 %v352_v31, %v225_v27  ;;  %v121_v31 = vld [vmem:[%s839_s0 + $0x260] sm:$0xff] }
  0x6b   :  { %v249_v35 = vmul.f32 %v121_v31, %v121_v31 }
  0x6c   :  { %v354_v37 = vadd.f32 %v353_v34, %v226_v30  ;;  %v122_v34 = vld [vmem:[%s839_s0 + $0x268] sm:$0xff] }
  0x6d   :  { %v250_v38 = vmul.f32 %v122_v34, %v122_v34 }
  0x6e   :  { %v355_v40 = vadd.f32 %v354_v37, %v227_v33  ;;  %v123_v37 = vld [vmem:[%s839_s0 + $0x270] sm:$0xff] }
  0x6f   :  { %v251_v41 = vmul.f32 %v123_v37, %v123_v37 }
  0x70   :  { %v356_v43 = vadd.f32 %v355_v40, %v228_v36  ;;  %v124_v40 = vld [vmem:[%s839_s0 + $0x278] sm:$0xff] }
  0x71   :  { %v252_v44 = vmul.f32 %v124_v40, %v124_v40 }
  0x72   :  { %v357_v46 = vadd.f32 %v356_v43, %v229_v39  ;;  %v125_v43 = vld [vmem:[%s839_s0 + $0x280] sm:$0xff] }
  0x73   :  { %v253_v47 = vmul.f32 %v125_v43, %v125_v43 }
  0x74   :  { %v358_v49 = vadd.f32 %v357_v46, %v230_v42  ;;  %v126_v46 = vld [vmem:[%s839_s0 + $0x288] sm:$0xff] }
  0x75   :  { %v254_v50 = vmul.f32 %v126_v46, %v126_v46 }
  0x76   :  { %v359_v52 = vadd.f32 %v358_v49, %v231_v45  ;;  %v127_v49 = vld [vmem:[%s839_s0 + $0x290] sm:$0xff] }
  0x77   :  { %v255_v53 = vmul.f32 %v127_v49, %v127_v49 }
  0x78   :  { %v360_v55 = vadd.f32 %v359_v52, %v232_v48  ;;  %v128_v52 = vld [vmem:[%s839_s0 + $0x298] sm:$0xff] }
  0x79   :  { %v256_v56 = vmul.f32 %v128_v52, %v128_v52 }
  0x7a   :  { %v361_v58 = vadd.f32 %v360_v55, %v233_v51  ;;  %v129_v55 = vld [vmem:[%s839_s0 + $0x2a0] sm:$0xff] }
  0x7b   :  { %v257_v59 = vmul.f32 %v129_v55, %v129_v55 }
  0x7c   :  { %v362_v61 = vadd.f32 %v361_v58, %v234_v54  ;;  %v130_v58 = vld [vmem:[%s839_s0 + $0x2a8] sm:$0xff] }
  0x7d   :  { %v258_v62 = vmul.f32 %v130_v58, %v130_v58 }
  0x7e   :  { %v363_v0 = vadd.f32 %v362_v61, %v235_v57  ;;  %v131_v61 = vld [vmem:[%s839_s0 + $0x2b0] sm:$0xff] }
  0x7f   :  { %v259_v1 = vmul.f32 %v131_v61, %v131_v61 }
  0x80   :  { %v364_v3 = vadd.f32 %v363_v0, %v236_v60  ;;  %v132_v0 = vld [vmem:[%s839_s0 + $0x2b8] sm:$0xff] }
  0x81   :  { %v260_v4 = vmul.f32 %v132_v0, %v132_v0 }
  0x82   :  { %v365_v6 = vadd.f32 %v364_v3, %v237_v63  ;;  %v133_v3 = vld [vmem:[%s839_s0 + $0x2c0] sm:$0xff] }
  0x83   :  { %v261_v7 = vmul.f32 %v133_v3, %v133_v3 }
  0x84   :  { %v366_v9 = vadd.f32 %v365_v6, %v238_v2  ;;  %v134_v6 = vld [vmem:[%s839_s0 + $0x2c8] sm:$0xff] }
  0x85   :  { %v262_v10 = vmul.f32 %v134_v6, %v134_v6 }
  0x86   :  { %v367_v12 = vadd.f32 %v366_v9, %v239_v5  ;;  %v135_v9 = vld [vmem:[%s839_s0 + $0x2d0] sm:$0xff] }
  0x87   :  { %v263_v13 = vmul.f32 %v135_v9, %v135_v9 }
  0x88   :  { %v368_v15 = vadd.f32 %v367_v12, %v240_v8  ;;  %v136_v12 = vld [vmem:[%s839_s0 + $0x2d8] sm:$0xff] }
  0x89   :  { %v264_v16 = vmul.f32 %v136_v12, %v136_v12 }
  0x8a   :  { %v369_v18 = vadd.f32 %v368_v15, %v241_v11  ;;  %v137_v15 = vld [vmem:[%s839_s0 + $0x2e0] sm:$0xff] }
  0x8b   :  { %v265_v19 = vmul.f32 %v137_v15, %v137_v15 }
  0x8c   :  { %v370_v21 = vadd.f32 %v369_v18, %v242_v14  ;;  %v138_v18 = vld [vmem:[%s839_s0 + $0x2e8] sm:$0xff] }
  0x8d   :  { %v266_v22 = vmul.f32 %v138_v18, %v138_v18 }
  0x8e   :  { %v371_v24 = vadd.f32 %v370_v21, %v243_v17  ;;  %v139_v21 = vld [vmem:[%s839_s0 + $0x2f0] sm:$0xff] }
  0x8f   :  { %v267_v25 = vmul.f32 %v139_v21, %v139_v21 }
  0x90   :  { %v372_v27 = vadd.f32 %v371_v24, %v244_v20  ;;  %v140_v24 = vld [vmem:[%s839_s0 + $0x2f8] sm:$0xff] }
  0x91   :  { %v268_v28 = vmul.f32 %v140_v24, %v140_v24 }
  0x92   :  { %v373_v30 = vadd.f32 %v372_v27, %v245_v23  ;;  %v141_v27 = vld [vmem:[%s839_s0 + $0x300] sm:$0xff] }
  0x93   :  { %v269_v31 = vmul.f32 %v141_v27, %v141_v27 }
  0x94   :  { %v374_v33 = vadd.f32 %v373_v30, %v246_v26  ;;  %v142_v30 = vld [vmem:[%s839_s0 + $0x308] sm:$0xff] }
  0x95   :  { %v270_v34 = vmul.f32 %v142_v30, %v142_v30 }
  0x96   :  { %v375_v36 = vadd.f32 %v374_v33, %v247_v29  ;;  %v143_v33 = vld [vmem:[%s839_s0 + $0x310] sm:$0xff] }
  0x97   :  { %v271_v37 = vmul.f32 %v143_v33, %v143_v33 }
  0x98   :  { %v376_v39 = vadd.f32 %v375_v36, %v248_v32  ;;  %v144_v36 = vld [vmem:[%s839_s0 + $0x318] sm:$0xff] }
  0x99   :  { %v272_v40 = vmul.f32 %v144_v36, %v144_v36 }
  0x9a   :  { %v377_v42 = vadd.f32 %v376_v39, %v249_v35  ;;  %v145_v39 = vld [vmem:[%s839_s0 + $0x320] sm:$0xff] }
  0x9b   :  { %v273_v43 = vmul.f32 %v145_v39, %v145_v39 }
  0x9c   :  { %v378_v45 = vadd.f32 %v377_v42, %v250_v38  ;;  %v146_v42 = vld [vmem:[%s839_s0 + $0x328] sm:$0xff] }
  0x9d   :  { %v274_v46 = vmul.f32 %v146_v42, %v146_v42 }
  0x9e   :  { %v379_v48 = vadd.f32 %v378_v45, %v251_v41  ;;  %v147_v45 = vld [vmem:[%s839_s0 + $0x330] sm:$0xff] }
  0x9f   :  { %v275_v49 = vmul.f32 %v147_v45, %v147_v45 }
  0xa0   :  { %v380_v51 = vadd.f32 %v379_v48, %v252_v44  ;;  %v148_v48 = vld [vmem:[%s839_s0 + $0x338] sm:$0xff] }
  0xa1   :  { %v276_v52 = vmul.f32 %v148_v48, %v148_v48 }
  0xa2   :  { %v381_v54 = vadd.f32 %v380_v51, %v253_v47  ;;  %v149_v51 = vld [vmem:[%s839_s0 + $0x340] sm:$0xff] }
  0xa3   :  { %v277_v55 = vmul.f32 %v149_v51, %v149_v51 }
  0xa4   :  { %v382_v57 = vadd.f32 %v381_v54, %v254_v50  ;;  %v150_v54 = vld [vmem:[%s839_s0 + $0x348] sm:$0xff] }
  0xa5   :  { %v278_v58 = vmul.f32 %v150_v54, %v150_v54 }
  0xa6   :  { %v383_v60 = vadd.f32 %v382_v57, %v255_v53  ;;  %v151_v57 = vld [vmem:[%s839_s0 + $0x350] sm:$0xff] }
  0xa7   :  { %v279_v61 = vmul.f32 %v151_v57, %v151_v57 }
  0xa8   :  { %v384_v63 = vadd.f32 %v383_v60, %v256_v56  ;;  %v152_v60 = vld [vmem:[%s839_s0 + $0x358] sm:$0xff] }
  0xa9   :  { %v280_v0 = vmul.f32 %v152_v60, %v152_v60 }
  0xaa   :  { %v385_v2 = vadd.f32 %v384_v63, %v257_v59  ;;  %v153_v63 = vld [vmem:[%s839_s0 + $0x360] sm:$0xff] }
  0xab   :  { %v281_v3 = vmul.f32 %v153_v63, %v153_v63 }
  0xac   :  { %v386_v5 = vadd.f32 %v385_v2, %v258_v62  ;;  %v154_v2 = vld [vmem:[%s839_s0 + $0x368] sm:$0xff] }
  0xad   :  { %v282_v6 = vmul.f32 %v154_v2, %v154_v2 }
  0xae   :  { %v387_v8 = vadd.f32 %v386_v5, %v259_v1  ;;  %v155_v5 = vld [vmem:[%s839_s0 + $0x370] sm:$0xff] }
  0xaf   :  { %v283_v9 = vmul.f32 %v155_v5, %v155_v5 }
  0xb0   :  { %v388_v11 = vadd.f32 %v387_v8, %v260_v4  ;;  %v156_v8 = vld [vmem:[%s839_s0 + $0x378] sm:$0xff] }
  0xb1   :  { %v284_v12 = vmul.f32 %v156_v8, %v156_v8 }
  0xb2   :  { %v389_v14 = vadd.f32 %v388_v11, %v261_v7  ;;  %v157_v11 = vld [vmem:[%s839_s0 + $0x380] sm:$0xff] }
  0xb3   :  { %v285_v15 = vmul.f32 %v157_v11, %v157_v11 }
  0xb4   :  { %v390_v17 = vadd.f32 %v389_v14, %v262_v10  ;;  %v158_v14 = vld [vmem:[%s839_s0 + $0x388] sm:$0xff] }
  0xb5   :  { %v286_v18 = vmul.f32 %v158_v14, %v158_v14 }
  0xb6   :  { %v391_v20 = vadd.f32 %v390_v17, %v263_v13  ;;  %v159_v17 = vld [vmem:[%s839_s0 + $0x390] sm:$0xff] }
  0xb7   :  { %v287_v21 = vmul.f32 %v159_v17, %v159_v17 }
  0xb8   :  { %v392_v23 = vadd.f32 %v391_v20, %v264_v16  ;;  %v160_v20 = vld [vmem:[%s839_s0 + $0x398] sm:$0xff] }
  0xb9   :  { %v288_v24 = vmul.f32 %v160_v20, %v160_v20 }
  0xba   :  { %v393_v26 = vadd.f32 %v392_v23, %v265_v19  ;;  %v161_v23 = vld [vmem:[%s839_s0 + $0x3a0] sm:$0xff] }
  0xbb   :  { %v289_v27 = vmul.f32 %v161_v23, %v161_v23 }
  0xbc   :  { %v394_v29 = vadd.f32 %v393_v26, %v266_v22  ;;  %v162_v26 = vld [vmem:[%s839_s0 + $0x3a8] sm:$0xff] }
  0xbd   :  { %v290_v30 = vmul.f32 %v162_v26, %v162_v26 }
  0xbe   :  { %v395_v32 = vadd.f32 %v394_v29, %v267_v25  ;;  %v163_v29 = vld [vmem:[%s839_s0 + $0x3b0] sm:$0xff] }
  0xbf   :  { %v291_v33 = vmul.f32 %v163_v29, %v163_v29 }
  0xc0   :  { %v396_v35 = vadd.f32 %v395_v32, %v268_v28  ;;  %v164_v32 = vld [vmem:[%s839_s0 + $0x3b8] sm:$0xff] }
  0xc1   :  { %v292_v36 = vmul.f32 %v164_v32, %v164_v32 }
  0xc2   :  { %v397_v38 = vadd.f32 %v396_v35, %v269_v31  ;;  %v165_v35 = vld [vmem:[%s839_s0 + $0x3c0] sm:$0xff] }
  0xc3   :  { %v293_v39 = vmul.f32 %v165_v35, %v165_v35 }
  0xc4   :  { %v398_v41 = vadd.f32 %v397_v38, %v270_v34  ;;  %v166_v38 = vld [vmem:[%s839_s0 + $0x3c8] sm:$0xff] }
  0xc5   :  { %v294_v42 = vmul.f32 %v166_v38, %v166_v38 }
  0xc6   :  { %v399_v44 = vadd.f32 %v398_v41, %v271_v37  ;;  %v167_v41 = vld [vmem:[%s839_s0 + $0x3d0] sm:$0xff] }
  0xc7   :  { %v295_v45 = vmul.f32 %v167_v41, %v167_v41 }
  0xc8   :  { %v400_v47 = vadd.f32 %v399_v44, %v272_v40  ;;  %v168_v44 = vld [vmem:[%s839_s0 + $0x3d8] sm:$0xff] }
  0xc9   :  { %v296_v48 = vmul.f32 %v168_v44, %v168_v44 }
  0xca   :  { %v401_v50 = vadd.f32 %v400_v47, %v273_v43  ;;  %v169_v47 = vld [vmem:[%s839_s0 + $0x3e0] sm:$0xff] }
  0xcb   :  { %v297_v51 = vmul.f32 %v169_v47, %v169_v47 }
  0xcc   :  { %v402_v53 = vadd.f32 %v401_v50, %v274_v46  ;;  %v170_v50 = vld [vmem:[%s839_s0 + $0x3e8] sm:$0xff] }
  0xcd   :  { %v298_v54 = vmul.f32 %v170_v50, %v170_v50 }
  0xce   :  { %v403_v56 = vadd.f32 %v402_v53, %v275_v49  ;;  %v171_v53 = vld [vmem:[%s839_s0 + $0x3f0] sm:$0xff] }
  0xcf   :  { %v299_v57 = vmul.f32 %v171_v53, %v171_v53 }
  0xd0   :  { %v404_v59 = vadd.f32 %v403_v56, %v276_v52  ;;  %v172_v56 = vld [vmem:[%s839_s0 + $0x3f8] sm:$0xff] }
  0xd2   :  { %v405_v62 = vadd.f32 %v404_v59, %v277_v55  ;;  %v300_v59 = vmul.f32 %v172_v56, %v172_v56 }
  0xd4   :  { %v406_v1 = vadd.f32 %v405_v62, %v278_v58 }
  0xd6   :  { %v407_v4 = vadd.f32 %v406_v1, %v279_v61 }
  0xd8   :  { %v408_v7 = vadd.f32 %v407_v4, %v280_v0 }
  0xda   :  { %v409_v10 = vadd.f32 %v408_v7, %v281_v3 }
  0xdc   :  { %v410_v13 = vadd.f32 %v409_v10, %v282_v6 }
  0xde   :  { %v411_v16 = vadd.f32 %v410_v13, %v283_v9 }
  0xe0   :  { %v412_v19 = vadd.f32 %v411_v16, %v284_v12 }
  0xe2   :  { %v413_v22 = vadd.f32 %v412_v19, %v285_v15 }
  0xe4   :  { %v414_v25 = vadd.f32 %v413_v22, %v286_v18 }
  0xe6   :  { %v415_v28 = vadd.f32 %v414_v25, %v287_v21 }
  0xe8   :  { %v416_v31 = vadd.f32 %v415_v28, %v288_v24 }
  0xea   :  { %v417_v34 = vadd.f32 %v416_v31, %v289_v27 }
  0xec   :  { %v418_v37 = vadd.f32 %v417_v34, %v290_v30 }
  0xee   :  { %v419_v40 = vadd.f32 %v418_v37, %v291_v33 }
  0xf0   :  { %v420_v43 = vadd.f32 %v419_v40, %v292_v36 }
  0xf2   :  { %v421_v46 = vadd.f32 %v420_v43, %v293_v39 }
  0xf4   :  { %v422_v49 = vadd.f32 %v421_v46, %v294_v42 }
  0xf6   :  { %v423_v52 = vadd.f32 %v422_v49, %v295_v45 }
  0xf8   :  { %v424_v55 = vadd.f32 %v423_v52, %v296_v48 }
  0xfa   :  { %v425_v58 = vadd.f32 %v424_v55, %v297_v51 }
  0xfc   :  { %v426_v60 = vadd.f32 %v425_v58, %v298_v54 }
  0xfe   :  { %v427_v61 = vadd.f32 %v426_v60, %v299_v57 }
 0x100   :  { %v428_v62 = vadd.f32 %v427_v61, %v300_v59 }
 0x102   :  { %430 = vst [vmem:[%s840_s1] sm:$0xff] %v428_v62 }

</bundles_post_ra>
